<compile_context>
chip_gen: v5e
topology: v5e:2x2
jax: 0.10.0
libtpu: 0.0.40
codegen_flags: <defaults>
</compile_context>

<pallas_src>
import functools

import jax
import jax.numpy as jnp
from jax.experimental import pallas as pl
from jax.experimental.pallas import tpu as pltpu

LANES = 128


def _sbce_lovasz_kernel(p_total, gts_ref, off_ref, logits_ref, labels_ref,
                        es_ref, gt_ref, u_ref, sl_ref, out_ref):
    """One grid step processes a (TR, 128) sublane-dense chunk of pixels.

    Scalar prefetch: gts_ref (total positives, int32[1]), off_ref (exclusive
    per-chunk cumsum offsets, int32[nsteps]).  No carried state -> the grid
    axis is fully parallel.
    """
    step = pl.program_id(0)
    tr, lanes = gt_ref.shape

    # ---------------- Stable BCE partial (unsorted chunk) ----------------
    logits = logits_ref[...]                            # f32
    labels = labels_ref[...].astype(jnp.float32)        # bf16 0/1 -> f32 (exact)
    neg_abs = -jnp.abs(logits)
    bce_vec = (jnp.maximum(logits, 0.0) - logits * labels
               + jnp.log(1.0 + jnp.exp(neg_abs)))
    bce_part = jnp.sum(bce_vec)

    # -------- Blocked inclusive cumsum of the sorted labels (MXU) --------
    gt_bf = gt_ref[...]                                 # (TR,128) bf16 in {0,1}
    cs_row = jnp.dot(gt_bf, u_ref[...],
                     preferred_element_type=jnp.float32)     # per-row inclusive cumsum
    # per-row totals = last lane of the inclusive cumsum (<=128, exact in bf16)
    rt = cs_row[:, lanes - 1:].astype(jnp.bfloat16)          # (TR,1)
    # exclusive prefix of row totals: tiny (TR,TR)@(TR,1) bf16 MXU matmul
    row_excl = jnp.dot(sl_ref[...], rt,
                       preferred_element_type=jnp.float32)   # (TR,1)
    carry = off_ref[step].astype(jnp.float32)                # positives before chunk
    cs = cs_row + row_excl + carry                           # global cumsum(gt_sorted)

    # ------------ Lovasz gradient: single fused Jaccard divide ------------
    gts = gts_ref[0].astype(jnp.float32)                # total number of positives
    gt_f = gt_bf.astype(jnp.float32)
    row_i = jax.lax.broadcasted_iota(jnp.int32, (tr, lanes), 0)
    col_i = jax.lax.broadcasted_iota(jnp.int32, (tr, lanes), 1)
    pos = (row_i * lanes + col_i + (step * (tr * lanes) + 1)).astype(jnp.float32)

    inter = gts - cs                                    # intersection
    uni = inter + pos                                   # = gts + cumsum(1-gt)
    numer = inter + gt_f * pos
    denom = uni * (uni - 1.0 + gt_f)
    # denom == 0 only at the global first element when gts == 0, where the
    # correct gradient is 1 (jaccard[0] = 1).
    grad = jnp.where(denom > 0.0, numer, 1.0) / jnp.maximum(denom, 1.0)

    es = es_ref[...]                                    # errors sorted descending
    # exp(es) can overflow for large positive errors but is masked by the
    # where (values only; forward pass is fine, a future VJP must re-derive).
    elu_p1 = jnp.where(es > 0.0, es + 1.0, jnp.exp(es))  # elu(x) + 1
    lov_part = jnp.sum(elu_p1 * grad)

    # ------------------- per-step partial -> own block -------------------
    partial = bce_part / p_total + lov_part
    r8 = jax.lax.broadcasted_iota(jnp.int32, (8, lanes), 0)
    c8 = jax.lax.broadcasted_iota(jnp.int32, (8, lanes), 1)
    out_ref[...] = jnp.where((r8 == 0) & (c8 == 0), partial, 0.0)


def sbce_lovasz(logit, truth):
    """Forward pass of SBCE_Lovasz: StableBCE(logit, truth) + lovasz_hinge(logit, truth)."""
    logits = logit.reshape(-1).astype(jnp.float32)
    labels = truth.reshape(-1).astype(jnp.float32)
    p_orig = logits.shape[0]
    assert p_orig < (1 << 24), "f32 integer cumsum exactness requires < 2^24 pixels"

    # Pad pixel count to a multiple of 8*128 with neutral pixels that add
    # exactly 0 to BCE (logit=-1e9, label=0) and 0 to Lovasz (error ~ -1e9
    # sorts last: elu+1 == 0 and grad == 0 there).
    p_sub = 8 * LANES
    p_pad = ((p_orig + p_sub - 1) // p_sub) * p_sub
    if p_pad != p_orig:
        pad = p_pad - p_orig
        logits = jnp.concatenate([logits, jnp.full((pad,), -1e9, jnp.float32)])
        labels = jnp.concatenate([labels, jnp.zeros((pad,), jnp.float32)])
    rows = p_pad // LANES

    # errors = 1 - logits * signs (tiny elementwise glue before the sort)
    signs = 2.0 * labels - 1.0
    errors = 1.0 - logits * signs

    # TODO(synk): the global descending sort + permutation gather has no Pallas
    # TPU primitive; done in plain JAX (stable sort -> same ordering as argsort).
    neg_keys, gt_sorted = jax.lax.sort_key_val(-errors, labels)
    errors_sorted = -neg_keys

    gts = jnp.sum(labels).astype(jnp.int32).reshape(1)   # total positives

    # Rows per grid step: largest multiple of 8 dividing rows (cap 1024).
    tr = 8
    for cand in (1024, 512, 256, 128, 64, 32, 16, 8):
        if rows % cand == 0:
            tr = cand
            break
    nsteps = rows // tr

    # Exclusive per-chunk cumsum offsets (breaks the serial carry -> parallel grid).
    chunk_sums = jnp.sum(gt_sorted.reshape(nsteps, tr * LANES), axis=1)
    offsets = (jnp.cumsum(chunk_sums) - chunk_sums).astype(jnp.int32)

    logits2d = logits.reshape(rows, LANES)                       # f32
    labels2d = labels.reshape(rows, LANES).astype(jnp.bfloat16)  # 0/1 exact
    es2d = errors_sorted.reshape(rows, LANES)                    # f32
    gt2d = gt_sorted.reshape(rows, LANES).astype(jnp.bfloat16)   # 0/1 exact

    # Constant triangular operands (bf16, constant index_map -> fetched once
    # per core and kept resident; scratch-side generation would not be
    # initialized on the second core under a parallel grid).
    lane_idx = jnp.arange(LANES)
    upper128 = (lane_idx[:, None] <= lane_idx[None, :]).astype(jnp.bfloat16)
    row_idx = jnp.arange(tr)
    strict_lower = (row_idx[:, None] > row_idx[None, :]).astype(jnp.bfloat16)

    grid_spec = pltpu.PrefetchScalarGridSpec(
        num_scalar_prefetch=2,
        grid=(nsteps,),
        in_specs=[
            pl.BlockSpec((tr, LANES), lambda i, g, o: (i, 0)),      # logits f32
            pl.BlockSpec((tr, LANES), lambda i, g, o: (i, 0)),      # labels bf16
            pl.BlockSpec((tr, LANES), lambda i, g, o: (i, 0)),      # errors_sorted f32
            pl.BlockSpec((tr, LANES), lambda i, g, o: (i, 0)),      # gt_sorted bf16
            pl.BlockSpec((LANES, LANES), lambda i, g, o: (0, 0)),   # 128x128 upper-tri bf16
            pl.BlockSpec((tr, tr), lambda i, g, o: (0, 0)),         # TRxTR strict-lower bf16
        ],
        out_specs=pl.BlockSpec((8, LANES), lambda i, g, o: (i, 0)),
    )

    out = pl.pallas_call(
        functools.partial(_sbce_lovasz_kernel, float(p_orig)),
        out_shape=jax.ShapeDtypeStruct((nsteps * 8, LANES), jnp.float32),
        grid_spec=grid_spec,
        compiler_params=pltpu.CompilerParams(
            dimension_semantics=("parallel",)),   # no carried state -> both TCs on v7x
    )(gts, offsets, logits2d, labels2d, es2d, gt2d, upper128, strict_lower)
    return jnp.sum(out)


def _reference(logit, truth):
    """Pure-JAX reference mirroring the PyTorch module."""
    logits = logit.reshape(-1).astype(jnp.float32)
    labels = truth.reshape(-1).astype(jnp.float32)
    neg_abs = -jnp.abs(logits)
    bce = jnp.mean(jnp.maximum(logits, 0.0) - logits * labels + jnp.log(1.0 + jnp.exp(neg_abs)))
    signs = 2.0 * labels - 1.0
    errors = 1.0 - logits * signs
    perm = jnp.argsort(-errors)
    es = errors[perm]
    gt = labels[perm]
    gts = gt.sum()
    inter = gts - jnp.cumsum(gt)
    uni = gts + jnp.cumsum(1.0 - gt)
    jac = 1.0 - inter / uni
    grad = jnp.concatenate([jac[:1], jac[1:] - jac[:-1]])
    elu_p1 = jnp.where(es > 0.0, es + 1.0, jnp.exp(es))
    return bce + jnp.sum(elu_p1 * grad)


if __name__ == "__main__":
    key = jax.random.PRNGKey(0)
    k1, k2 = jax.random.split(key)
    B, H, W = 2, 16, 16                       # P = 512 (padding path exercised)
    logit = jax.random.normal(k1, (B, H, W), dtype=jnp.float32)
    truth = (jax.random.uniform(k2, (B, H, W)) > 0.5).astype(jnp.float32)

    out = sbce_lovasz(logit, truth)
    out = jax.block_until_ready(out)

    ref = _reference(logit, truth)
    assert jnp.allclose(out, ref, rtol=1e-4, atol=1e-4), (out, ref)
    print("KERNEL_OK")
</pallas_src>

<mosaic_0001>
module attributes {stable_mosaic.version = 11 : i64} {
  func.func @_sbce_lovasz_kernel(%arg0: i32, %arg1: memref<1xi32, #tpu.memory_space<smem>>, %arg2: memref<1xi32, #tpu.memory_space<smem>>, %arg3: memref<8x128xf32, #tpu.memory_space<vmem>>, %arg4: memref<8x128xbf16, #tpu.memory_space<vmem>>, %arg5: memref<8x128xf32, #tpu.memory_space<vmem>>, %arg6: memref<8x128xbf16, #tpu.memory_space<vmem>>, %arg7: memref<128x128xbf16, #tpu.memory_space<vmem>>, %arg8: memref<8x8xbf16, #tpu.memory_space<vmem>>, %arg9: memref<8x128xf32, #tpu.memory_space<vmem>>) attributes {dimension_semantics = [#tpu.dimension_semantics<parallel>], iteration_bounds = array<i64: 1>, scalar_prefetch = 2 : i64, scratch_operands = 0 : i64, tpu.core_type = #tpu.core_type<tc>, window_params = [{transform_indices = @transform_0, window_bounds = array<i64: 8, 128>}, {transform_indices = @transform_1, window_bounds = array<i64: 8, 128>}, {transform_indices = @transform_2, window_bounds = array<i64: 8, 128>}, {transform_indices = @transform_3, window_bounds = array<i64: 8, 128>}, {pipeline_mode = #tpu.pipeline_mode<synchronous>, transform_indices = @transform_4, window_bounds = array<i64: 128, 128>}, {pipeline_mode = #tpu.pipeline_mode<synchronous>, transform_indices = @transform_5, window_bounds = array<i64: 8, 8>}, {transform_indices = @transform_6, window_bounds = array<i64: 8, 128>}]} {
    %c0 = arith.constant 0 : index
    %c0_0 = arith.constant 0 : index
    %0 = vector.load %arg3[%c0, %c0_0] : memref<8x128xf32, #tpu.memory_space<vmem>>, vector<8x128xf32>
    %c0_1 = arith.constant 0 : index
    %c0_2 = arith.constant 0 : index
    %1 = vector.load %arg4[%c0_1, %c0_2] : memref<8x128xbf16, #tpu.memory_space<vmem>>, vector<8x128xbf16>
    %2 = arith.extf %1 : vector<8x128xbf16> to vector<8x128xf32>
    %3 = math.absf %0 : vector<8x128xf32>
    %cst = arith.constant 0.000000e+00 : f32
    %4 = vector.broadcast %cst : f32 to vector<8x128xf32>
    %5 = arith.subf %4, %3 : vector<8x128xf32>
    %cst_3 = arith.constant 0.000000e+00 : f32
    %6 = vector.broadcast %cst_3 : f32 to vector<8x128xf32>
    %7 = arith.maximumf %0, %6 : vector<8x128xf32>
    %8 = arith.mulf %0, %2 : vector<8x128xf32>
    %9 = arith.subf %7, %8 : vector<8x128xf32>
    %10 = math.exp %5 : vector<8x128xf32>
    %cst_4 = arith.constant 1.000000e+00 : f32
    %11 = vector.broadcast %cst_4 : f32 to vector<8x128xf32>
    %12 = arith.addf %11, %10 : vector<8x128xf32>
    %13 = math.log %12 : vector<8x128xf32>
    %14 = arith.addf %9, %13 : vector<8x128xf32>
    %15 = vector.shape_cast %14 : vector<8x128xf32> to vector<1x8x128xf32>
    %cst_5 = arith.constant dense<0.000000e+00> : vector<1xf32>
    %16 = vector.multi_reduction <add>, %15, %cst_5 [1, 2] : vector<1x8x128xf32> to vector<1xf32>
    %17 = vector.shape_cast %16 : vector<1xf32> to vector<1x1x1xf32>
    %18 = vector.extract %17[0, 0, 0] : f32 from vector<1x1x1xf32>
    %c0_6 = arith.constant 0 : index
    %c0_7 = arith.constant 0 : index
    %19 = vector.load %arg6[%c0_6, %c0_7] : memref<8x128xbf16, #tpu.memory_space<vmem>>, vector<8x128xbf16>
    %c0_8 = arith.constant 0 : index
    %c0_9 = arith.constant 0 : index
    %20 = vector.load %arg7[%c0_8, %c0_9] : memref<128x128xbf16, #tpu.memory_space<vmem>>, vector<128x128xbf16>
    %cst_10 = arith.constant dense<0.000000e+00> : vector<8x128xf32>
    %21 = tpu.matmul %19, %20, %cst_10 {dimension_numbers = #tpu.dot_dimension_numbers<[1], [0], [0], [1], [0, 0, 1, 1], [], []>} : vector<8x128xbf16>, vector<128x128xbf16>, vector<8x128xf32> -> vector<8x128xf32>
    %22 = vector.extract_strided_slice %21 {offsets = [0, 127], sizes = [8, 1], strides = [1, 1]} : vector<8x128xf32> to vector<8x1xf32>
    %23 = arith.truncf %22 : vector<8x1xf32> to vector<8x1xbf16>
    %c0_11 = arith.constant 0 : index
    %c0_12 = arith.constant 0 : index
    %24 = vector.load %arg8[%c0_11, %c0_12] : memref<8x8xbf16, #tpu.memory_space<vmem>>, vector<8x8xbf16>
    %cst_13 = arith.constant dense<0.000000e+00> : vector<8x1xf32>
    %25 = tpu.matmul %24, %23, %cst_13 {dimension_numbers = #tpu.dot_dimension_numbers<[1], [0], [0], [1], [0, 0, 1, 1], [], []>} : vector<8x8xbf16>, vector<8x1xbf16>, vector<8x1xf32> -> vector<8x1xf32>
    %26 = arith.index_cast %arg0 : i32 to index
    %27 = memref.load %arg2[%26] : memref<1xi32, #tpu.memory_space<smem>>
    %28 = arith.sitofp %27 : i32 to f32
    %29 = vector.broadcast %25 : vector<8x1xf32> to vector<8x128xf32>
    %30 = arith.addf %21, %29 : vector<8x128xf32>
    %31 = vector.broadcast %28 : f32 to vector<8x128xf32>
    %32 = arith.addf %30, %31 : vector<8x128xf32>
    %c0_14 = arith.constant 0 : index
    %33 = memref.load %arg1[%c0_14] : memref<1xi32, #tpu.memory_space<smem>>
    %34 = arith.sitofp %33 : i32 to f32
    %35 = arith.extf %19 : vector<8x128xbf16> to vector<8x128xf32>
    %36 = tpu.iota {dimensions = array<i32: 0>} : vector<8x128xi32>
    %37 = tpu.iota {dimensions = array<i32: 1>} : vector<8x128xi32>
    %c128_i32 = arith.constant 128 : i32
    %38 = vector.broadcast %c128_i32 : i32 to vector<8x128xi32>
    %39 = arith.muli %36, %38 : vector<8x128xi32>
    %40 = arith.addi %39, %37 : vector<8x128xi32>
    %c1024_i32 = arith.constant 1024 : i32
    %41 = arith.muli %arg0, %c1024_i32 : i32
    %c1_i32 = arith.constant 1 : i32
    %42 = arith.addi %41, %c1_i32 : i32
    %43 = vector.broadcast %42 : i32 to vector<8x128xi32>
    %44 = arith.addi %40, %43 : vector<8x128xi32>
    %45 = arith.sitofp %44 : vector<8x128xi32> to vector<8x128xf32>
    %46 = vector.broadcast %34 : f32 to vector<8x128xf32>
    %47 = arith.subf %46, %32 : vector<8x128xf32>
    %48 = arith.addf %47, %45 : vector<8x128xf32>
    %49 = arith.mulf %35, %45 : vector<8x128xf32>
    %50 = arith.addf %47, %49 : vector<8x128xf32>
    %cst_15 = arith.constant 1.000000e+00 : f32
    %51 = vector.broadcast %cst_15 : f32 to vector<8x128xf32>
    %52 = arith.subf %48, %51 : vector<8x128xf32>
    %53 = arith.addf %52, %35 : vector<8x128xf32>
    %54 = arith.mulf %48, %53 : vector<8x128xf32>
    %cst_16 = arith.constant 0.000000e+00 : f32
    %55 = vector.broadcast %cst_16 : f32 to vector<8x128xf32>
    %56 = arith.cmpf ogt, %54, %55 : vector<8x128xf32>
    %cst_17 = arith.constant 1.000000e+00 : f32
    %57 = vector.broadcast %cst_17 : f32 to vector<8x128xf32>
    %58 = arith.select %56, %50, %57 : vector<8x128xi1>, vector<8x128xf32>
    %cst_18 = arith.constant 1.000000e+00 : f32
    %59 = vector.broadcast %cst_18 : f32 to vector<8x128xf32>
    %60 = arith.maximumf %54, %59 : vector<8x128xf32>
    %61 = arith.divf %58, %60 : vector<8x128xf32>
    %c0_19 = arith.constant 0 : index
    %c0_20 = arith.constant 0 : index
    %62 = vector.load %arg5[%c0_19, %c0_20] : memref<8x128xf32, #tpu.memory_space<vmem>>, vector<8x128xf32>
    %cst_21 = arith.constant 0.000000e+00 : f32
    %63 = vector.broadcast %cst_21 : f32 to vector<8x128xf32>
    %64 = arith.cmpf ogt, %62, %63 : vector<8x128xf32>
    %cst_22 = arith.constant 1.000000e+00 : f32
    %65 = vector.broadcast %cst_22 : f32 to vector<8x128xf32>
    %66 = arith.addf %62, %65 : vector<8x128xf32>
    %67 = math.exp %62 : vector<8x128xf32>
    %68 = arith.select %64, %66, %67 : vector<8x128xi1>, vector<8x128xf32>
    %69 = arith.mulf %68, %61 : vector<8x128xf32>
    %70 = vector.shape_cast %69 : vector<8x128xf32> to vector<1x8x128xf32>
    %cst_23 = arith.constant dense<0.000000e+00> : vector<1xf32>
    %71 = vector.multi_reduction <add>, %70, %cst_23 [1, 2] : vector<1x8x128xf32> to vector<1xf32>
    %72 = vector.shape_cast %71 : vector<1xf32> to vector<1x1x1xf32>
    %73 = vector.extract %72[0, 0, 0] : f32 from vector<1x1x1xf32>
    %cst_24 = arith.constant 5.120000e+02 : f32
    %74 = arith.divf %18, %cst_24 : f32
    %75 = arith.addf %74, %73 : f32
    %76 = tpu.iota {dimensions = array<i32: 0>} : vector<8x128xi32>
    %77 = tpu.iota {dimensions = array<i32: 1>} : vector<8x128xi32>
    %c0_i32 = arith.constant 0 : i32
    %78 = vector.broadcast %c0_i32 : i32 to vector<8x128xi32>
    %79 = arith.cmpi eq, %76, %78 : vector<8x128xi32>
    %c0_i32_25 = arith.constant 0 : i32
    %80 = vector.broadcast %c0_i32_25 : i32 to vector<8x128xi32>
    %81 = arith.cmpi eq, %77, %80 : vector<8x128xi32>
    %82 = arith.andi %79, %81 : vector<8x128xi1>
    %cst_26 = arith.constant 0.000000e+00 : f32
    %83 = vector.broadcast %75 : f32 to vector<8x128xf32>
    %84 = vector.broadcast %cst_26 : f32 to vector<8x128xf32>
    %85 = arith.select %82, %83, %84 : vector<8x128xi1>, vector<8x128xf32>
    %c0_27 = arith.constant 0 : index
    %c0_28 = arith.constant 0 : index
    %86 = vector.load %arg9[%c0_27, %c0_28] : memref<8x128xf32, #tpu.memory_space<vmem>>, vector<8x128xf32>
    tpu.vector_store %arg9[%c0_27, %c0_28], %85 {strides = array<i32>} : memref<8x128xf32, #tpu.memory_space<vmem>>, vector<8x128xf32>,
    return
  }
  func.func @transform_0(%arg0: i32, %arg1: memref<1xi32, #tpu.memory_space<smem>>, %arg2: memref<1xi32, #tpu.memory_space<smem>>) -> (i32, i32) {
    %c0_i32 = arith.constant 0 : i32
    %c0_i32_0 = arith.constant 0 : i32
    return %arg0, %c0_i32 : i32, i32
  }
  func.func @transform_1(%arg0: i32, %arg1: memref<1xi32, #tpu.memory_space<smem>>, %arg2: memref<1xi32, #tpu.memory_space<smem>>) -> (i32, i32) {
    %c0_i32 = arith.constant 0 : i32
    %c0_i32_0 = arith.constant 0 : i32
    return %arg0, %c0_i32 : i32, i32
  }
  func.func @transform_2(%arg0: i32, %arg1: memref<1xi32, #tpu.memory_space<smem>>, %arg2: memref<1xi32, #tpu.memory_space<smem>>) -> (i32, i32) {
    %c0_i32 = arith.constant 0 : i32
    %c0_i32_0 = arith.constant 0 : i32
    return %arg0, %c0_i32 : i32, i32
  }
  func.func @transform_3(%arg0: i32, %arg1: memref<1xi32, #tpu.memory_space<smem>>, %arg2: memref<1xi32, #tpu.memory_space<smem>>) -> (i32, i32) {
    %c0_i32 = arith.constant 0 : i32
    %c0_i32_0 = arith.constant 0 : i32
    return %arg0, %c0_i32 : i32, i32
  }
  func.func @transform_4(%arg0: i32, %arg1: memref<1xi32, #tpu.memory_space<smem>>, %arg2: memref<1xi32, #tpu.memory_space<smem>>) -> (i32, i32) {
    %c0_i32 = arith.constant 0 : i32
    %c0_i32_0 = arith.constant 0 : i32
    %c0_i32_1 = arith.constant 0 : i32
    return %c0_i32, %c0_i32_0 : i32, i32
  }
  func.func @transform_5(%arg0: i32, %arg1: memref<1xi32, #tpu.memory_space<smem>>, %arg2: memref<1xi32, #tpu.memory_space<smem>>) -> (i32, i32) {
    %c0_i32 = arith.constant 0 : i32
    %c0_i32_0 = arith.constant 0 : i32
    %c0_i32_1 = arith.constant 0 : i32
    return %c0_i32, %c0_i32_0 : i32, i32
  }
  func.func @transform_6(%arg0: i32, %arg1: memref<1xi32, #tpu.memory_space<smem>>, %arg2: memref<1xi32, #tpu.memory_space<smem>>) -> (i32, i32) {
    %c0_i32 = arith.constant 0 : i32
    %c0_i32_0 = arith.constant 0 : i32
    return %arg0, %c0_i32 : i32, i32
  }
}

</mosaic_0001>

<bundles_post_ra>
// kernel: tpu_custom_call.1
= control target key start
LH: loop header
LB: loop body
LE: loop exit
PB: predicated region body
PF: predicated region fallthrough
CT: control target
= control target key end

     0   :  { %15 = vsyncpa [#allocation6], 0  ;;  %s605_s0 = inlined_call_operand.<no memory space> [shape: s32[1], index: 0, kind: input, shape index: {}]   ;;  %s606_s1 = inlined_call_operand.<no memory space> [shape: s32[1], index: 1, kind: input, shape index: {}]   ;;  %s607_s2 = inlined_call_operand.hbm [shape: f32[8,128], index: 2, kind: input, shape index: {}]   ;;  %s608_s3 = inlined_call_operand.vmem [shape: bf16[8,128], index: 3, kind: input, shape index: {}]   ;;  %s609_s4 = inlined_call_operand.hbm [shape: f32[8,128], index: 4, kind: input, shape index: {}]   ;;  %s610_s5 = inlined_call_operand.hbm [shape: bf16[8,128], index: 5, kind: input, shape index: {}]   ;;  %s611_s6 = inlined_call_operand.hbm [shape: bf16[128,128], index: 6, kind: input, shape index: {}]   ;;  %s612_s7 = inlined_call_operand.vmem [shape: bf16[8,8], index: 7, kind: input, shape index: {}]   ;;  %s613_s8 = inlined_call_operand.hbm [shape: f32[8,128], index: 8, kind: output, shape index: {}]  }
   0x1   :  { %16 = vsyncpa [#allocation9], 0 }
   0x2   :  { %17 = vsyncpa [#allocation12], 0  ;;  %s37_s29 = sshll.u32 %s609_s4, 4  ;;  %s38_s29 = int_to_ptr.hbm [resolvable:$true] %s37_s29 }
   0x3   :  { %18 = vsyncpa [#allocation7], 0  ;;  %s511_s30 = smov [#allocation8]   ;;  %s24_s12 = sshll.u32 %s607_s2, 4  ;;  %s25_s12 = int_to_ptr.hbm [resolvable:$true] %s24_s12 }
   0x4   :  { %s39_s9 = sshll.u32 %s511_s30, 4  ;;  %s512_s13 = smov [#allocation5]   ;;  %s40_s9 = int_to_ptr.vmem [resolvable:$true] %s39_s9 }
   0x5   :  { %42 = dma.hbm_to_vmem [thread:$0]  %s38_s29, 128, %s40_s9, [#allocation9]  }
   0x6   :  { %s26_s14 = sshll.u32 %s512_s13, 4  ;;  %s48_s17 = sshll.u32 %s610_s5, 4  ;;  %s27_s14 = int_to_ptr.vmem [resolvable:$true] %s26_s14  ;;  %s49_s17 = int_to_ptr.hbm [resolvable:$true] %s48_s17 }
   0x7   :  { %29 = dma.hbm_to_vmem [thread:$0]  %s25_s12, 128, %s27_s14, [#allocation6]  }
   0x8   :  { %s58_s19 = sshll.u32 %s611_s6, 4  ;;  %s513_s20 = smov [#allocation10]   ;;  %s59_s19 = int_to_ptr.hbm [resolvable:$true] %s58_s19 }
   0x9   :  { %s50_s21 = sshll.u32 %s513_s20, 4  ;;  %s514_s2 = smov [#allocation11]   ;;  %s51_s21 = int_to_ptr.vmem [resolvable:$true] %s50_s21 }
   0xa   :  { %53 = dma.hbm_to_vmem [thread:$0]  %s49_s17, 64, %s51_s21, [#allocation9]  }
   0xb   :  { %s60_s22 = sshll.u32 %s514_s2, 4  ;;  %s515_s23 = smov 64   ;;  %s61_s22 = int_to_ptr.vmem [resolvable:$true] %s60_s22 }
   0xc   :  { %s516_s24 = smov 4  }
   0xd   :  { %66 = dma.hbm_to_vmem [thread:$0]  %s59_s19, 1024, %s61_s22, [#allocation12], %s515_s23, %s515_s23, %s516_s24  }
   0xe   :  { %503 = dma.done.wait [#allocation6], 128  }
   0xf   :  { %504 = vsyncadd [#allocation6], 4294967168 }
  0x10   :  { %505 = dma.done.wait [#allocation9], 192  }
  0x11   :  { %506 = vsyncadd [#allocation9], 4294967104 }
  0x12   :  { %507 = dma.done.wait [#allocation12], 1024  }
  0x13   :  { %508 = vsyncadd [#allocation12], 4294966272  ;;  %v355_v0 = vld [vmem:[#allocation11 + $0x38] sm:$0xff]  ;;  %v354_v1 = vld [vmem:[#allocation11 + $0x30] sm:$0xff]  ;;  %s517_s5 = smov 1   ;;  %v518_v12 = vmov 0   ;;  %v226_v28 = vlaneseq  ;;  %s214_s28 = scvt.s32.f32 %s606_s1 }
  0x14   :  { %174 = vmatpush.bf16.msra.mxu0 %v355_v0  ;;  %v353_v2 = vld [vmem:[#allocation11 + $0x28] sm:$0xff]  ;;  %v352_v3 = vld [vmem:[#allocation11 + $0x20] sm:$0xff]  ;;  %v351_v4 = vld [vmem:[#allocation11 + $0x18] sm:$0xff]  ;;  %372 = vset.pattern.permute.xlu0 %v518_v12  ;;  %vm196_vm0 = vcmask 1043456   ;;  %vm192_vm1 = vcmask 64512   ;;  %s224_s9 = scvt.s32.f32 %s605_s0  ;;  %s520_s12 = smov [#allocation13]  }
  0x15   :  { %v350_v5 = vld [vmem:[#allocation11 + $0x10] sm:$0xff]  ;;  %v349_v6 = vld [vmem:[#allocation11 + $0x8] sm:$0xff]  ;;  %v348_v7 = vld [vmem:[#allocation11] sm:$0xff]  ;;  %v587_v32 = vshrl.u32 %v226_v28, 7  ;;  %v589_v34 = vand.u32 127, %v226_v28  ;;  %v221_v37 = vstv %s214_s28  ;;  %s300_s13 = sshll.u32 %s520_s12, 4  ;;  %s301_s13 = int_to_ptr.vmem [resolvable:$true] %s300_s13 }
  0x16   :  { %v578_v8 = vld [vmem:[#allocation10] sm:$0xf]  ;;  %v188_v15 = vld [vmem:[%s612_s7] sm:$0xf]  ;;  %v237_v41 = vstv %s224_s9  ;;  %v263_v51 = vld [vmem:[#allocation8] sm:$0xff]  ;;  %s302_s16 = sshll.u32 %s613_s8, 4  ;;  %s303_s16 = int_to_ptr.hbm [resolvable:$true] %s302_s16 }
  0x17   :  { %v86_v18 = vld [vmem:[#allocation5] sm:$0xff]  ;;  %v230_v35 = vmul.u32 128, %v587_v32  ;;  %v225_v46 = vunpack.c.l.bf16 %v578_v8  ;;  %v266_v52 = vmul.f32 1.442695, %v263_v51  ;;  %v265_v60 = vadd.f32 1.0, %v263_v51 }
  0x18   :  { %175 = vmatpush.bf16.msra.mxu0 %v354_v1  ;;  %v89_v19 = vand.u32 2147483647, %v86_v18  ;;  %v87_v22 = vld [vmem:[%s608_s3] sm:$0xf]  ;;  %v91_v26 = vmax.f32 %v86_v18, 0.0  ;;  %vm264_vm5 = vcmp.gt.f32.partialorder %v263_v51, 0.0 }
  0x19   :  { %v88_v24 = vunpack.c.l.bf16 %v87_v22  ;;  %v231_v36 = vadd.s32 %v230_v35, %v589_v34  ;;  %vm289_vm9 = vcmp.eq.s32.totalorder %v587_v32, 0  ;;  %vm290_vm10 = vcmp.eq.s32.totalorder %v589_v34, 0 }
  0x1a   :  { %v90_v20 = vsub.f32 0.0, %v89_v19  ;;  %vm291_vm11 = vmand %vm289_vm9, %vm290_vm10 }
  0x1b   :  { %v92_v27 = vmul.f32 %v88_v24, %v86_v18  ;;  %v235_v39 = vadd.s32 1, %v231_v36 }
  0x1c   :  { %176 = vmatpush.bf16.msra.mxu0 %v353_v2  ;;  %v94_v21 = vmul.f32 1.442695, %v90_v20 }
  0x1d   :  { %v93_v29 = vsub.f32 %v91_v26, %v92_v27  ;;  %v236_v43 = vcvt.s32.f32 %v235_v39 }
  0x1e   :  { %373 = vpow2.f32 %v94_v21 }
  0x1f   :  { %v240_v56 = vmul.f32 %v236_v43, %v225_v46 }
  0x20   :  { %177 = vmatpush.bf16.msra.mxu0 %v352_v3 }
  0x24   :  { %178 = vmatpush.bf16.msra.mxu0 %v351_v4  ;;  %v374_v23 = vpop.eup %373 }
  0x25   :  { %v96_v25 = vadd.f32 1.0, %v374_v23 }
  0x27   :  { %375 = vlog2.f32 %v96_v25 }
  0x28   :  { %179 = vmatpush.bf16.msra.mxu0 %v350_v5 }
  0x2c   :  { %180 = vmatpush.bf16.msra.mxu0 %v349_v6 }
  0x2d   :  { %v376_v30 = vpop.eup %375 }
  0x2e   :  { %v98_v31 = vmul.f32 0.6931472, %v376_v30 }
  0x30   :  { %181 = vmatpush.bf16.msra.mxu0 %v348_v7  ;;  %v99_v33 = vadd.f32 %v98_v31, %v93_v29 }
  0x32   :  { %100 = vadd.xlane.f32.xlu1 %v99_v33 }
  0x33   :  { %182 = vmatmul.bf16.vlgmr.msra.gmra.mxu0 %v578_v8 }
  0xa5   :  { %v101_v7 = vpop.xlane.xlu1 %100 }
  0xa6   :  { %v102_v8 = vrot.slane %v101_v7, 4 }
  0xb0   :  { %v183_v9 = vpop.f32.mrf.mxu0 }
  0xb1   :  { %v187_v10 = vpack.c.bf16 %v183_v9, %v183_v9 }
  0xb3   :  { %190 = vrot.lane.b32.xlu0 %v187_v10, %s517_s5 }
  0xb8   :  { %v185_v11 = vpop.f32.mrf.mxu0 }
 0x125   :  { %v191_v13 = vpop.permute.xlu0 %190 }
 0x126   :  { %v198_v14 = vsel %vm196_vm0, %v191_v13, 0 }
 0x127   :  { %207 = vmatpush.bf16.msra.mxu1 %v198_v14  ;;  %v519_v14 = vmov 512.0  }
 0x12a   :  { %346 = vmatmul.msk.bf16.vlgmr.msra.gmra.mxu1 %vm192_vm1, %v188_v15 }
 0x1a7   :  { %v209_v16 = vpop.f32.mrf.mxu1 }
 0x1a8   :  { %217 = vperm.xlu0 %372, %v209_v16  }
 0x1af   :  { %v211_v17 = vpop.f32.mrf.mxu1 }
 0x21a   :  { %v218_v38 = vpop.permute.xlu0 %217 }
 0x21b   :  { %v220_v40 = vadd.f32 %v218_v38, %v183_v9  ;;  %v103_v9 = vadd.f32 %v102_v8, %v101_v7 }
 0x21d   :  { %v222_v42 = vadd.f32 %v221_v37, %v220_v40  ;;  %v104_v10 = vrot.slane %v103_v9, 2 }
 0x21f   :  { %v238_v44 = vsub.f32 %v237_v41, %v222_v42  ;;  %v105_v11 = vadd.f32 %v104_v10, %v103_v9 }
 0x221   :  { %v239_v45 = vadd.f32 %v238_v44, %v236_v43  ;;  %v241_v63 = vadd.f32 %v240_v56, %v238_v44  ;;  %v106_v12 = vrot.slane %v105_v11, 1 }
 0x223   :  { %v347_v47 = vadd.f32 -1.0, %v239_v45  ;;  %v107_v13 = vadd.f32 %v106_v12, %v105_v11 }
 0x225   :  { %v243_v48 = vadd.f32 %v347_v47, %v225_v46  ;;  %356 = vpush %v107_v13 }
 0x227   :  { %v244_v49 = vmul.f32 %v243_v48, %v239_v45 }
 0x229   :  { %v247_v50 = vmax.f32 %v244_v49, 1.0  ;;  %vm245_vm3 = vcmp.gt.f32.partialorder %v244_v49, 0.0 }
 0x22a   :  { %v246_v2 = vsel %vm245_vm3, %v241_v63, 1.0 }
 0x22b   :  { %377 = vrcp.f32 %v247_v50  ;;  %v259_v57 = vand.u32 2147483648, %v247_v50  ;;  %v257_v59 = vand.u32 2147483647, %v247_v50  ;;  %vm253_vm4 = vweird.f32 %v247_v50 }
 0x22c   :  { %379 = vpow2.f32 %v266_v52 }
 0x22d   :  { %v260_v0 = vor.u32 1.1754944e-38, %v259_v57  ;;  %vm258_vm7 = vcmp.eq.f32.partialorder %v257_v59, 8.507059e+37  ;;  %381 = vrcp.f32 %v519_v14 }
 0x231   :  { %v378_v53 = vpop.eup %377 }
 0x232   :  { %v249_v54 = vmul.f32 %v378_v53, %v247_v50  ;;  %vm254_vm2 = vweird.f32 %v378_v53  ;;  %v380_v61 = vpop.eup %379 }
 0x233   :  { %vm255_vm6 = vmor %vm253_vm4, %vm254_vm2  ;;  %v268_v4 = vsel %vm264_vm5, %v265_v60, %v380_v61  ;;  %v382_v15 = vpop.eup %381 }
 0x234   :  { %v250_v55 = vsub.f32 1.0, %v249_v54  ;;  %v280_v16 = vmul.f32 512.0, %v382_v15  ;;  %vm284_vm8 = vweird.f32 %v382_v15 }
 0x236   :  { %v251_v58 = vmul.f32 %v378_v53, %v250_v55  ;;  %v281_v17 = vsub.f32 1.0, %v280_v16 }
 0x238   :  { %v252_v62 = vadd.f32 %v378_v53, %v251_v58  ;;  %v282_v21 = vmul.f32 %v382_v15, %v281_v17 }
 0x23a   :  { %v256_v1 = vsel %vm255_vm6, %v378_v53, %v252_v62  ;;  %v283_v24 = vadd.f32 %v382_v15, %v282_v21 }
 0x23b   :  { %v261_v3 = vsel %vm258_vm7, %v260_v0, %v256_v1 }
 0x23c   :  { %v262_v5 = vmul.f32 %v261_v3, %v246_v2  ;;  %v285_v27 = vsel %vm284_vm8, %v382_v15, %v283_v24 }
 0x23e   :  { %v269_v6 = vmul.f32 %v268_v4, %v262_v5 }
 0x240   :  { %270 = vadd.xlane.f32.xlu1 %v269_v6 }
 0x256   :  { %s357_s0 = spop %356 }
 0x2b3   :  { %v271_v18 = vpop.xlane.xlu1 %270 }
 0x2b4   :  { %v272_v19 = vrot.slane %v271_v18, 4 }
 0x2b6   :  { %v273_v20 = vadd.f32 %v272_v19, %v271_v18 }
 0x2b8   :  { %v274_v22 = vrot.slane %v273_v20, 2 }
 0x2ba   :  { %v275_v23 = vadd.f32 %v274_v22, %v273_v20 }
 0x2bc   :  { %v276_v25 = vrot.slane %v275_v23, 1 }
 0x2be   :  { %v277_v26 = vadd.f32 %v276_v25, %v275_v23 }
 0x2c0   :  { %358 = vpush %v277_v26 }
 0x2c1   :  { %360 = vpush %v285_v27 }
 0x2f1   :  { %s359_s1 = spop %358 }
 0x2f2   :  { %s361_s10 = spop %360 }
 0x2f3   :  { %s287_s11 = smul.f32 %s361_s10, %s357_s0 }
 0x2f5   :  { %s288_s17 = sadd.f32 %s359_s1, %s287_s11 }
 0x2f7   :  { %v292_v28 = vstv %s288_s17 }
 0x2f8   :  { %v293_v29 = vsel %vm291_vm11, %v292_v28, 0.0 }
 0x2f9   :  { %294 = vst [vmem:[#allocation13] sm:$0xff] %v293_v29 }
 0x2fa   :  { %305 = dma.vmem_to_hbm [thread:$0]  %s301_s13, 128, %s303_s16, [#allocation7]  }
 0x2fb   :  { %509 = dma.done.wait [#allocation7], 128  }
 0x2fc   :  { %510 = vsyncadd [#allocation7], 4294967168 }
 0x2fd   :  { %310 = vsyncpa [#allocation6], 1 }
 0x2fe   :  { %311 = vsyncpa [#allocation9], 1 }
 0x2ff   :  { %312 = vsyncpa [#allocation12], 1 }
 0x300   :  { %313 = vsyncpa [#allocation7], 1 }

</bundles_post_ra>
